<compile_context>
chip_gen: v7x
topology: tpu7x:2x2x1
jax: 0.10.0
libtpu: 0.0.40
codegen_flags: <defaults>
</compile_context>

<pallas_src>
import functools

import jax
import jax.numpy as jnp
from jax.experimental import pallas as pl
from jax.experimental.pallas import tpu as pltpu


def _round_up(x, m):
    return ((x + m - 1) // m) * m


def _fq_affine(x, inv_scale, scale, zp, qmin, qmax):
    """torch.fake_quantize_per_tensor_affine with a precomputed reciprocal scale."""
    q = jnp.clip(jnp.round(x * inv_scale + zp), qmin, qmax)
    return (q - zp) * scale


# --------------------------- Pallas kernels ----------------------------------

def _qgemm_kernel(params_ref, patches_ref, w_ref, b_ref, y_ref):
    # params (SMEM f32[3]): [inv_scale_in, zp_in, scale_in]
    inv_s_in = params_ref[0]
    zp_in = params_ref[1]
    s_in = params_ref[2]
    # Fake-quantize the input-activation tile (quint8 affine, [0, 255]).
    x_fq = _fq_affine(patches_ref[...], inv_s_in, s_in, zp_in, 0.0, 255.0)
    # Conv-as-GEMM on the MXU; weights are already fake-quantized + lane-padded.
    y_ref[...] = (
        jnp.dot(x_fq, w_ref[...], preferred_element_type=jnp.float32) + b_ref[...]
    )


def _fq_out_kernel(params_ref, y_ref, o_ref):
    # params (SMEM f32[3]): [inv_scale_out, zp_out, scale_out]
    o_ref[...] = _fq_affine(
        y_ref[...], params_ref[0], params_ref[2], params_ref[1], 0.0, 255.0
    )


# --------------------------- forward wrapper ---------------------------------

@functools.partial(jax.jit, static_argnames=("kernel_size", "padding", "tile_m"))
def quant_fx_forward(x_nchw, weight, bias, *, kernel_size=3, padding=1, tile_m=256):
    """Forward of the QAT-prepared conv module. x_nchw: (N, C_in, H, W).

    tile_m=256 so the toy problem exercises the multi-tile pipeline; use
    512-1024 for production-sized M (re-derive for v7x's 64 MiB VMEM).
    """
    N, C_in, H, W = x_nchw.shape
    C_out = weight.shape[0]
    K = kernel_size

    x_nchw = x_nchw.astype(jnp.float32)
    weight = weight.astype(jnp.float32)
    bias = bias.astype(jnp.float32)

    # ---- observers (MinMaxObserver semantics; plain-JAX glue) ---------------
    # input activation: quint8 affine [0, 255]
    x_min = jnp.minimum(jnp.min(x_nchw), 0.0)
    x_max = jnp.maximum(jnp.max(x_nchw), 0.0)
    s_in = jnp.maximum((x_max - x_min) / 255.0, 1e-8)
    zp_in = jnp.clip(jnp.round(-x_min / s_in), 0.0, 255.0)
    # weight: qint8 symmetric [-128, 127], zero_point = 0
    w_absmax = jnp.max(jnp.abs(weight))
    s_w = jnp.maximum(w_absmax / 127.5, 1e-8)

    # ---- weight fake-quant, hoisted out of the per-tile kernel (tiny) -------
    w_mat = weight.reshape(C_out, C_in * K * K).T                      # (Kdim, C_out)
    w_fq = jnp.clip(jnp.round(w_mat * (1.0 / s_w)), -128.0, 127.0) * s_w

    # ---- im2col (glue) -------------------------------------------------------
    # TODO(synk): for large shapes, gather the KxK taps inside the kernel via manual DMA
    #             instead of materializing a K*K-times-larger patches array in HBM.
    xp = jnp.pad(x_nchw, ((0, 0), (0, 0), (padding, padding), (padding, padding)))
    taps = []
    for dh in range(K):
        for dw in range(K):
            taps.append(xp[:, :, dh:dh + H, dw:dw + W])                # (N, C_in, H, W)
    patches = jnp.stack(taps, axis=2)                                  # (N, C_in, K*K, H, W)
    patches = patches.transpose(0, 3, 4, 1, 2).reshape(N * H * W, C_in * K * K)

    M, Kdim = patches.shape

    # ---- lane-dense / tile padding ------------------------------------------
    C_out_pad = _round_up(max(C_out, 128), 128)        # lane-dense output slab
    TILE_M = min(tile_m, _round_up(M, 8))
    M_pad = _round_up(M, TILE_M)
    grid_m = M_pad // TILE_M

    patches_p = jnp.pad(patches, ((0, M_pad - M), (0, 0)))
    w_fq_p = jnp.pad(w_fq, ((0, 0), (0, C_out_pad - C_out)))           # fq(0)=0: exact
    b_p = jnp.pad(bias, (0, C_out_pad - C_out)).reshape(1, C_out_pad)

    params_in = jnp.stack([1.0 / s_in, zp_in, s_in]).astype(jnp.float32)

    # ---- kernel 1: fq(activations) + GEMM + bias (tiled over M, pipelined) ---
    y_raw = pl.pallas_call(
        _qgemm_kernel,
        out_shape=jax.ShapeDtypeStruct((M_pad, C_out_pad), jnp.float32),
        grid=(grid_m,),
        in_specs=[
            pl.BlockSpec(memory_space=pltpu.MemorySpace.SMEM),          # params
            pl.BlockSpec((TILE_M, Kdim), lambda i: (i, 0)),             # patches tile
            pl.BlockSpec((Kdim, C_out_pad), lambda i: (0, 0)),          # weights (resident)
            pl.BlockSpec((1, C_out_pad), lambda i: (0, 0)),             # bias (resident)
        ],
        out_specs=pl.BlockSpec((TILE_M, C_out_pad), lambda i: (i, 0)),
        compiler_params=pltpu.CompilerParams(dimension_semantics=("parallel",)),
        cost_estimate=pl.CostEstimate(
            flops=2 * M_pad * Kdim * C_out_pad,
            transcendentals=0,
            bytes_accessed=4 * (M_pad * Kdim + Kdim * C_out_pad
                                + C_out_pad + M_pad * C_out_pad)),
    )(params_in, patches_p, w_fq_p, b_p)

    # ---- output-activation observer (sees conv of fake-quantized operands) --
    y_valid = y_raw[:M, :C_out]
    y_min = jnp.minimum(jnp.min(y_valid), 0.0)
    y_max = jnp.maximum(jnp.max(y_valid), 0.0)
    s_out = jnp.maximum((y_max - y_min) / 255.0, 1e-8)
    zp_out = jnp.clip(jnp.round(-y_min / s_out), 0.0, 255.0)
    params_out = jnp.stack([1.0 / s_out, zp_out, s_out]).astype(jnp.float32)

    # ---- kernel 2: output fake-quant (elementwise, tiled over M) -------------
    out = pl.pallas_call(
        _fq_out_kernel,
        out_shape=jax.ShapeDtypeStruct((M_pad, C_out_pad), jnp.float32),
        grid=(grid_m,),
        in_specs=[
            pl.BlockSpec(memory_space=pltpu.MemorySpace.SMEM),          # params
            pl.BlockSpec((TILE_M, C_out_pad), lambda i: (i, 0)),        # y_raw tile
        ],
        out_specs=pl.BlockSpec((TILE_M, C_out_pad), lambda i: (i, 0)),
        compiler_params=pltpu.CompilerParams(dimension_semantics=("parallel",)),
        cost_estimate=pl.CostEstimate(
            flops=4 * M_pad * C_out_pad,
            transcendentals=0,
            bytes_accessed=8 * M_pad * C_out_pad),
    )(params_out, y_raw)

    # (M, C_out) -> NCHW
    y = out[:M, :C_out].reshape(N, H, W, C_out).transpose(0, 3, 1, 2)
    aux = (y_valid, patches, w_fq, bias, params_in, params_out)
    return y, aux


# TODO(synk): QAT training-time behaviors (observer freezing, BN freezing, adaptive layer
#             freezing, convert/export) are host-side control flow with no kernel equivalent;
#             only the fake-quantized forward pass is implemented.


if __name__ == "__main__":
    key = jax.random.PRNGKey(0)
    k_x, k_w, k_b = jax.random.split(key, 3)

    # Small shapes: batch=2, C_in=4, spatial=16x16, C_out=8, 3x3 conv, pad=1.
    N, C_in, H, W, C_out, K = 2, 4, 16, 16, 8, 3
    x = jax.random.normal(k_x, (N, C_in, H, W), dtype=jnp.float32)
    fan_in = C_in * K * K
    weight = jax.random.normal(k_w, (C_out, C_in, K, K), dtype=jnp.float32) / jnp.sqrt(fan_in)
    bias = jax.random.normal(k_b, (C_out,), dtype=jnp.float32) * 0.1

    y, aux = quant_fx_forward(x, weight, bias)
    y = jax.block_until_ready(y)
    y_raw_valid, patches, w_fq, b_vec, params_in, params_out = aux

    # ---- check 1: fused fq(x) + GEMM + bias vs plain-JAX reference ----------
    x_fq_ref = _fq_affine(patches, params_in[0], params_in[2], params_in[1], 0.0, 255.0)
    y_raw_ref = x_fq_ref @ w_fq + b_vec[None, :]
    d1 = jnp.abs(y_raw_valid - y_raw_ref)
    # tolerate (at most) an isolated round-at-boundary flip of one input quant step
    assert float(jnp.max(d1)) < 2e-2, float(jnp.max(d1))
    assert float(jnp.mean(d1)) < 1e-3, float(jnp.mean(d1))

    # ---- check 2: output fake-quant kernel vs the same formula in JAX -------
    y_ref = _fq_affine(y_raw_valid, params_out[0], params_out[2], params_out[1], 0.0, 255.0)
    y_ref = y_ref.reshape(N, H, W, C_out).transpose(0, 3, 1, 2)
    assert y.shape == (N, C_out, H, W)
    d2 = jnp.abs(y - y_ref)
    step_out = float(params_out[2])
    assert float(jnp.max(d2)) <= 1.05 * step_out + 1e-4, float(jnp.max(d2))
    assert float(jnp.mean(d2)) < 1e-3, float(jnp.mean(d2))

    print("KERNEL_OK")
</pallas_src>

<mosaic_0001>
module attributes {stable_mosaic.version = 11 : i64} {
  func.func @_fq_out_kernel(%arg0: i32, %arg1: memref<3xf32, #tpu.memory_space<smem>>, %arg2: memref<256x128xf32, #tpu.memory_space<vmem>>, %arg3: memref<256x128xf32, #tpu.memory_space<vmem>>) attributes {dimension_semantics = [#tpu.dimension_semantics<parallel>], iteration_bounds = array<i64: 2>, scalar_prefetch = 0 : i64, scratch_operands = 0 : i64, tpu.core_type = #tpu.core_type<tc>, window_params = [{transform_indices = @transform_0, window_bounds = array<i64: 3>}, {transform_indices = @transform_1, window_bounds = array<i64: 256, 128>}, {transform_indices = @transform_2, window_bounds = array<i64: 256, 128>}]} {
    %c0 = arith.constant 0 : index
    %c0_0 = arith.constant 0 : index
    %0 = vector.load %arg2[%c0, %c0_0] : memref<256x128xf32, #tpu.memory_space<vmem>>, vector<256x128xf32>
    %c0_1 = arith.constant 0 : index
    %1 = memref.load %arg1[%c0_1] : memref<3xf32, #tpu.memory_space<smem>>
    %c2 = arith.constant 2 : index
    %2 = memref.load %arg1[%c2] : memref<3xf32, #tpu.memory_space<smem>>
    %c1 = arith.constant 1 : index
    %3 = memref.load %arg1[%c1] : memref<3xf32, #tpu.memory_space<smem>>
    %4 = vector.broadcast %1 : f32 to vector<256x128xf32>
    %5 = arith.mulf %0, %4 : vector<256x128xf32>
    %6 = vector.broadcast %3 : f32 to vector<256x128xf32>
    %7 = arith.addf %5, %6 : vector<256x128xf32>
    %8 = math.roundeven %7 : vector<256x128xf32>
    %cst = arith.constant 0.000000e+00 : f32
    %cst_2 = arith.constant 2.550000e+02 : f32
    %9 = vector.broadcast %cst : f32 to vector<256x128xf32>
    %10 = arith.maximumf %9, %8 : vector<256x128xf32>
    %11 = vector.broadcast %cst_2 : f32 to vector<256x128xf32>
    %12 = arith.minimumf %11, %10 : vector<256x128xf32>
    %13 = vector.broadcast %3 : f32 to vector<256x128xf32>
    %14 = arith.subf %12, %13 : vector<256x128xf32>
    %15 = vector.broadcast %2 : f32 to vector<256x128xf32>
    %16 = arith.mulf %14, %15 : vector<256x128xf32>
    %c0_3 = arith.constant 0 : index
    %c0_4 = arith.constant 0 : index
    %17 = vector.load %arg3[%c0_3, %c0_4] : memref<256x128xf32, #tpu.memory_space<vmem>>, vector<256x128xf32>
    tpu.vector_store %arg3[%c0_3, %c0_4], %16 {strides = array<i32>} : memref<256x128xf32, #tpu.memory_space<vmem>>, vector<256x128xf32>,
    return
  }
  func.func @transform_0(%arg0: i32) -> i32 {
    %c0_i32 = arith.constant 0 : i32
    %c0_i32_0 = arith.constant 0 : i32
    return %c0_i32 : i32
  }
  func.func @transform_1(%arg0: i32) -> (i32, i32) {
    %c0_i32 = arith.constant 0 : i32
    %c0_i32_0 = arith.constant 0 : i32
    return %arg0, %c0_i32 : i32, i32
  }
  func.func @transform_2(%arg0: i32) -> (i32, i32) {
    %c0_i32 = arith.constant 0 : i32
    %c0_i32_0 = arith.constant 0 : i32
    return %arg0, %c0_i32 : i32, i32
  }
}

module attributes {stable_mosaic.version = 11 : i64} {
  func.func @_qgemm_kernel(%arg0: i32, %arg1: memref<3xf32, #tpu.memory_space<smem>>, %arg2: memref<256x36xf32, #tpu.memory_space<vmem>>, %arg3: memref<36x128xf32, #tpu.memory_space<vmem>>, %arg4: memref<1x128xf32, #tpu.memory_space<vmem>>, %arg5: memref<256x128xf32, #tpu.memory_space<vmem>>) attributes {dimension_semantics = [#tpu.dimension_semantics<parallel>], iteration_bounds = array<i64: 2>, scalar_prefetch = 0 : i64, scratch_operands = 0 : i64, tpu.core_type = #tpu.core_type<tc>, window_params = [{transform_indices = @transform_0, window_bounds = array<i64: 3>}, {transform_indices = @transform_1, window_bounds = array<i64: 256, 36>}, {pipeline_mode = #tpu.pipeline_mode<synchronous>, transform_indices = @transform_2, window_bounds = array<i64: 36, 128>}, {pipeline_mode = #tpu.pipeline_mode<synchronous>, transform_indices = @transform_3, window_bounds = array<i64: 1, 128>}, {transform_indices = @transform_4, window_bounds = array<i64: 256, 128>}]} {
    %c0 = arith.constant 0 : index
    %0 = memref.load %arg1[%c0] : memref<3xf32, #tpu.memory_space<smem>>
    %c1 = arith.constant 1 : index
    %1 = memref.load %arg1[%c1] : memref<3xf32, #tpu.memory_space<smem>>
    %c2 = arith.constant 2 : index
    %2 = memref.load %arg1[%c2] : memref<3xf32, #tpu.memory_space<smem>>
    %c0_0 = arith.constant 0 : index
    %c0_1 = arith.constant 0 : index
    %3 = vector.load %arg2[%c0_0, %c0_1] : memref<256x36xf32, #tpu.memory_space<vmem>>, vector<256x36xf32>
    %4 = vector.broadcast %0 : f32 to vector<256x36xf32>
    %5 = arith.mulf %3, %4 : vector<256x36xf32>
    %6 = vector.broadcast %1 : f32 to vector<256x36xf32>
    %7 = arith.addf %5, %6 : vector<256x36xf32>
    %8 = math.roundeven %7 : vector<256x36xf32>
    %cst = arith.constant 0.000000e+00 : f32
    %cst_2 = arith.constant 2.550000e+02 : f32
    %9 = vector.broadcast %cst : f32 to vector<256x36xf32>
    %10 = arith.maximumf %9, %8 : vector<256x36xf32>
    %11 = vector.broadcast %cst_2 : f32 to vector<256x36xf32>
    %12 = arith.minimumf %11, %10 : vector<256x36xf32>
    %13 = vector.broadcast %1 : f32 to vector<256x36xf32>
    %14 = arith.subf %12, %13 : vector<256x36xf32>
    %15 = vector.broadcast %2 : f32 to vector<256x36xf32>
    %16 = arith.mulf %14, %15 : vector<256x36xf32>
    %c0_3 = arith.constant 0 : index
    %c0_4 = arith.constant 0 : index
    %17 = vector.load %arg3[%c0_3, %c0_4] : memref<36x128xf32, #tpu.memory_space<vmem>>, vector<36x128xf32>
    %cst_5 = arith.constant dense<0.000000e+00> : vector<256x128xf32>
    %18 = tpu.matmul %16, %17, %cst_5 {dimension_numbers = #tpu.dot_dimension_numbers<[1], [0], [0], [1], [0, 0, 1, 1], [], []>} : vector<256x36xf32>, vector<36x128xf32>, vector<256x128xf32> -> vector<256x128xf32>
    %c0_6 = arith.constant 0 : index
    %c0_7 = arith.constant 0 : index
    %19 = vector.load %arg4[%c0_6, %c0_7] : memref<1x128xf32, #tpu.memory_space<vmem>>, vector<1x128xf32>
    %20 = vector.broadcast %19 : vector<1x128xf32> to vector<256x128xf32>
    %21 = arith.addf %18, %20 : vector<256x128xf32>
    %c0_8 = arith.constant 0 : index
    %c0_9 = arith.constant 0 : index
    %22 = vector.load %arg5[%c0_8, %c0_9] : memref<256x128xf32, #tpu.memory_space<vmem>>, vector<256x128xf32>
    tpu.vector_store %arg5[%c0_8, %c0_9], %21 {strides = array<i32>} : memref<256x128xf32, #tpu.memory_space<vmem>>, vector<256x128xf32>,
    return
  }
  func.func @transform_0(%arg0: i32) -> i32 {
    %c0_i32 = arith.constant 0 : i32
    %c0_i32_0 = arith.constant 0 : i32
    return %c0_i32 : i32
  }
  func.func @transform_1(%arg0: i32) -> (i32, i32) {
    %c0_i32 = arith.constant 0 : i32
    %c0_i32_0 = arith.constant 0 : i32
    return %arg0, %c0_i32 : i32, i32
  }
  func.func @transform_2(%arg0: i32) -> (i32, i32) {
    %c0_i32 = arith.constant 0 : i32
    %c0_i32_0 = arith.constant 0 : i32
    %c0_i32_1 = arith.constant 0 : i32
    return %c0_i32, %c0_i32_0 : i32, i32
  }
  func.func @transform_3(%arg0: i32) -> (i32, i32) {
    %c0_i32 = arith.constant 0 : i32
    %c0_i32_0 = arith.constant 0 : i32
    %c0_i32_1 = arith.constant 0 : i32
    return %c0_i32, %c0_i32_0 : i32, i32
  }
  func.func @transform_4(%arg0: i32) -> (i32, i32) {
    %c0_i32 = arith.constant 0 : i32
    %c0_i32_0 = arith.constant 0 : i32
    return %arg0, %c0_i32 : i32, i32
  }
}

</mosaic_0001>

<bundles_post_ra>
// kernel: quant_fx_forward.3
= control target key start
LH: loop header
LB: loop body
LE: loop exit
PB: predicated region body
PF: predicated region fallthrough
CT: control target
= control target key end

     0   :  { %7 = vsyncpa [#allocation3], 0  ;;  %s632_s9 = smov 0   ;;  %s879_s0 = inlined_call_operand.vmem [shape: f32[3], index: 0, kind: input, shape index: {}]   ;;  %s880_s1 = inlined_call_operand.vmem [shape: f32[512,128], index: 1, kind: input, shape index: {}]   ;;  %s881_s2 = inlined_call_operand.vmem [shape: f32[512,128], index: 2, kind: output, shape index: {}]  }
   0x1 LB: > { %s523_s10 = sadd.s32 4294967295, %s614_s9   ;;  %p525_p0 = scmp.ge.s32.totalorder %s614_s9, 1  ;;  %s614_s9 = sphi %s632_s9, %s13_s9  }
   0x2   : > { %p91_p1 = scmp.lt.s32.totalorder %s614_s9, 3  ;;  %s104_s13 = sshll.u32 %s879_s0, 4  ;;  %s105_s13 = int_to_ptr.vmem [resolvable:$true] %s104_s13 }
   0x3   : > { %p647_p3 = scmp.eq.s32.totalorder %s523_s10, 0  ;;  %s589_s16 = scalar_lea.vmem %s105_s13, 16 }
   0x4   : > { %p643_p2 = pnand %p525_p0, %p91_p1  ;;  %p590_p6 = scmp.ne.s32.totalorder %s105_s13, %s589_s16 }
   0x5   : > { %p597_p10 = scmp.lt.s32.totalorder %s105_s13, %s105_s13  ;;  %p598_p11 = scmp.lt.s32.totalorder %s589_s16, %s589_s16 }
   0x6   : > { %p574_p4 = pneg %p643_p2 }
   0x7   : > { %p599_p12 = por %p598_p11, %p597_p10 }
   0x8   : > { %p575_p5 = pnand %p647_p3, %p574_p4 }
   0xa   : > { %p591_p7 = pneg %p575_p5 }
   0xc   : > { %p592_p8 = pnand %p591_p7, %p590_p6 }
   0xe   : > { %p593_p9 = pneg %p592_p8 }
  0x10   : > { %p600_p13 = pnand %p599_p12, %p593_p9 }
  0x12   : > { %603 = shalt.err (!%p600_p13)
}
  0x13   : > { %s616_s17 = smov [#allocation2]   ;;  %126 = sbr.rel (%p643_p2) target bundleno = 99 (0x63), region = 28 }
  0x14   : > { %577 = dma.vmem_to_smem (!%p575_p5), %s105_s13, 16, %s616_s17, [#allocation3]  }
  0x1a   : > { %609 = dma.done.wait (%p647_p3), [#allocation3], 16  }
  0x1b   : > { %611 = vsyncadd (%p647_p3), [#allocation3], 4294967280 }
  0x1c   : > { %132 = sfence }
  0x1d   : > { %s530_s18 = sshll.u32 %s523_s10, 5  ;;  %s193_s19 = sld [smem:[#allocation2]] }
  0x1e   : > { %p150_p0 = scmp.lt.s32.totalorder %s530_s18, 63  ;;  %s534_s20 = sld [smem:[#allocation2 + $0x2]] }
  0x1f   : > { %s535_s21 = sld [smem:[#allocation2 + $0x1]] }
  0x20   : > { %s885_s18 = smov (!%p150_p0, %s530_s18), 63 }
  0x21   : > { %s531_s22 = sshll.u32 %s885_s18, 3 }
  0x22   : > { %s669_s25 = scalar_lea.vmem %s880_s1, %s531_s22  ;;  %s709_s28 = scalar_lea.vmem %s881_s2, %s531_s22 }
  0x23   : > { %v671_v0 = vstv %s193_s19  ;;  %v161_v1 = vld [vmem:[%s669_s25] sm:$0xff]  ;;  %v162_v2 = vld [vmem:[%s669_s25 + $0x8] sm:$0xff]  ;;  %v163_v3 = vld [vmem:[%s669_s25 + $0x10] sm:$0xff] }
  0x24   : > { %v197_v4 = vmul.f32 %v671_v0, %v161_v1  ;;  %v198_v6 = vmul.f32 %v671_v0, %v162_v2  ;;  %v199_v7 = vmul.f32 %v671_v0, %v163_v3  ;;  %v164_v8 = vld [vmem:[%s669_s25 + $0x18] sm:$0xff]  ;;  %v165_v9 = vld [vmem:[%s669_s25 + $0x20] sm:$0xff]  ;;  %v166_v10 = vld [vmem:[%s669_s25 + $0x28] sm:$0xff]  ;;  %v684_v11 = vstv %s534_s20 }
  0x25   : > { %v677_v5 = vstv %s535_s21  ;;  %v200_v12 = vmul.f32 %v671_v0, %v164_v8  ;;  %v201_v13 = vmul.f32 %v671_v0, %v165_v9  ;;  %v202_v14 = vmul.f32 %v671_v0, %v166_v10  ;;  %v167_v15 = vld [vmem:[%s669_s25 + $0x30] sm:$0xff]  ;;  %v168_v16 = vld [vmem:[%s669_s25 + $0x38] sm:$0xff]  ;;  %v169_v57 = vld [vmem:[%s669_s25 + $0x40] sm:$0xff] }
  0x26   : > { %v230_v17 = vadd.f32 %v677_v5, %v197_v4  ;;  %v231_v18 = vadd.f32 %v677_v5, %v198_v6  ;;  %v232_v19 = vadd.f32 %v677_v5, %v199_v7  ;;  %v203_v20 = vmul.f32 %v671_v0, %v167_v15  ;;  %v170_v58 = vld [vmem:[%s669_s25 + $0x48] sm:$0xff]  ;;  %v171_v59 = vld [vmem:[%s669_s25 + $0x50] sm:$0xff]  ;;  %v172_v1 = vld [vmem:[%s669_s25 + $0x58] sm:$0xff] }
  0x27   : > { %v233_v21 = vadd.f32 %v677_v5, %v200_v12  ;;  %v234_v22 = vadd.f32 %v677_v5, %v201_v13  ;;  %v235_v23 = vadd.f32 %v677_v5, %v202_v14  ;;  %v204_v24 = vmul.f32 %v671_v0, %v168_v16  ;;  %v173_v2 = vld [vmem:[%s669_s25 + $0x60] sm:$0xff]  ;;  %v174_v3 = vld [vmem:[%s669_s25 + $0x68] sm:$0xff]  ;;  %v175_v9 = vld [vmem:[%s669_s25 + $0x70] sm:$0xff] }
  0x28   : > { %v538_v25 = vround.rtne.f32 %v230_v17  ;;  %v539_v26 = vround.rtne.f32 %v231_v18  ;;  %v540_v27 = vround.rtne.f32 %v232_v19  ;;  %v236_v28 = vadd.f32 %v677_v5, %v203_v20  ;;  %v176_v15 = vld [vmem:[%s669_s25 + $0x78] sm:$0xff] }
  0x29   : > { %v541_v29 = vround.rtne.f32 %v233_v21  ;;  %v542_v30 = vround.rtne.f32 %v234_v22  ;;  %v543_v31 = vround.rtne.f32 %v235_v23  ;;  %v237_v32 = vadd.f32 %v677_v5, %v204_v24 }
  0x2a   : > { %v294_v33 = vmax.f32 %v538_v25, 0.0  ;;  %v295_v34 = vmax.f32 %v539_v26, 0.0  ;;  %v296_v35 = vmax.f32 %v540_v27, 0.0  ;;  %v544_v36 = vround.rtne.f32 %v236_v28 }
  0x2b   : > { %v297_v37 = vmax.f32 %v541_v29, 0.0  ;;  %v298_v38 = vmax.f32 %v542_v30, 0.0  ;;  %v299_v39 = vmax.f32 %v543_v31, 0.0  ;;  %v545_v40 = vround.rtne.f32 %v237_v32 }
  0x2c   : > { %v326_v41 = vmin.f32 %v294_v33, 255.0  ;;  %v327_v42 = vmin.f32 %v295_v34, 255.0  ;;  %v328_v43 = vmin.f32 %v296_v35, 255.0  ;;  %v300_v44 = vmax.f32 %v544_v36, 0.0 }
  0x2d   : > { %v329_v45 = vmin.f32 %v297_v37, 255.0  ;;  %v330_v46 = vmin.f32 %v298_v38, 255.0  ;;  %v331_v47 = vmin.f32 %v299_v39, 255.0  ;;  %v301_v48 = vmax.f32 %v545_v40, 0.0 }
  0x2e   : > { %v358_v49 = vsub.f32 %v326_v41, %v677_v5  ;;  %v359_v50 = vsub.f32 %v327_v42, %v677_v5  ;;  %v360_v51 = vsub.f32 %v328_v43, %v677_v5  ;;  %v332_v52 = vmin.f32 %v300_v44, 255.0 }
  0x2f   : > { %v361_v53 = vsub.f32 %v329_v45, %v677_v5  ;;  %v362_v54 = vsub.f32 %v330_v46, %v677_v5  ;;  %v363_v55 = vsub.f32 %v331_v47, %v677_v5  ;;  %v333_v56 = vmin.f32 %v301_v48, 255.0 }
  0x30   : > { %v391_v60 = vmul.f32 %v684_v11, %v358_v49  ;;  %v392_v61 = vmul.f32 %v684_v11, %v359_v50  ;;  %v393_v62 = vmul.f32 %v684_v11, %v360_v51  ;;  %v364_v63 = vsub.f32 %v332_v52, %v677_v5 }
  0x31   : > { %v394_v4 = vmul.f32 %v684_v11, %v361_v53  ;;  %v395_v6 = vmul.f32 %v684_v11, %v362_v54  ;;  %v396_v7 = vmul.f32 %v684_v11, %v363_v55  ;;  %v365_v8 = vsub.f32 %v333_v56, %v677_v5 }
  0x32   : > { %423 = vst [vmem:[%s709_s28] sm:$0xff] %v391_v60  ;;  %424 = vst [vmem:[%s709_s28 + $0x8] sm:$0xff] %v392_v61  ;;  %v397_v10 = vmul.f32 %v684_v11, %v364_v63  ;;  %v205_v12 = vmul.f32 %v671_v0, %v169_v57  ;;  %v206_v13 = vmul.f32 %v671_v0, %v170_v58  ;;  %v177_v60 = vld [vmem:[%s669_s25 + $0x80] sm:$0xff]  ;;  %v178_v61 = vld [vmem:[%s669_s25 + $0x88] sm:$0xff] }
  0x33   : > { %425 = vst [vmem:[%s709_s28 + $0x10] sm:$0xff] %v393_v62  ;;  %v207_v14 = vmul.f32 %v671_v0, %v171_v59  ;;  %426 = vst [vmem:[%s709_s28 + $0x18] sm:$0xff] %v394_v4  ;;  %v398_v16 = vmul.f32 %v684_v11, %v365_v8  ;;  %v208_v17 = vmul.f32 %v671_v0, %v172_v1  ;;  %v179_v62 = vld [vmem:[%s669_s25 + $0x90] sm:$0xff]  ;;  %v180_v4 = vld [vmem:[%s669_s25 + $0x98] sm:$0xff] }
  0x34   : > { %427 = vst [vmem:[%s709_s28 + $0x20] sm:$0xff] %v395_v6  ;;  %428 = vst [vmem:[%s709_s28 + $0x28] sm:$0xff] %v396_v7  ;;  %v209_v18 = vmul.f32 %v671_v0, %v173_v2  ;;  %v210_v19 = vmul.f32 %v671_v0, %v174_v3  ;;  %v238_v20 = vadd.f32 %v677_v5, %v205_v12  ;;  %v181_v6 = vld [vmem:[%s669_s25 + $0xa0] sm:$0xff]  ;;  %v182_v7 = vld [vmem:[%s669_s25 + $0xa8] sm:$0xff] }
  0x35   : > { %429 = vst [vmem:[%s709_s28 + $0x30] sm:$0xff] %v397_v10  ;;  %v239_v21 = vadd.f32 %v677_v5, %v206_v13  ;;  %v240_v22 = vadd.f32 %v677_v5, %v207_v14  ;;  %v211_v23 = vmul.f32 %v671_v0, %v175_v9  ;;  %430 = vst [vmem:[%s709_s28 + $0x38] sm:$0xff] %v398_v16  ;;  %v183_v13 = vld [vmem:[%s669_s25 + $0xb0] sm:$0xff] }
  0x36   : > { %v241_v24 = vadd.f32 %v677_v5, %v208_v17  ;;  %v242_v25 = vadd.f32 %v677_v5, %v209_v18  ;;  %v243_v26 = vadd.f32 %v677_v5, %v210_v19  ;;  %v212_v27 = vmul.f32 %v671_v0, %v176_v15  ;;  %v184_v18 = vld [vmem:[%s669_s25 + $0xb8] sm:$0xff] }
  0x37   : > { %v546_v28 = vround.rtne.f32 %v238_v20  ;;  %v547_v29 = vround.rtne.f32 %v239_v21  ;;  %v548_v30 = vround.rtne.f32 %v240_v22  ;;  %v244_v31 = vadd.f32 %v677_v5, %v211_v23 }
  0x38   : > { %v549_v32 = vround.rtne.f32 %v241_v24  ;;  %v550_v33 = vround.rtne.f32 %v242_v25  ;;  %v551_v34 = vround.rtne.f32 %v243_v26  ;;  %v245_v35 = vadd.f32 %v677_v5, %v212_v27 }
  0x39   : > { %v302_v36 = vmax.f32 %v546_v28, 0.0  ;;  %v303_v37 = vmax.f32 %v547_v29, 0.0  ;;  %v304_v38 = vmax.f32 %v548_v30, 0.0  ;;  %v552_v39 = vround.rtne.f32 %v244_v31 }
  0x3a   : > { %v305_v40 = vmax.f32 %v549_v32, 0.0  ;;  %v306_v41 = vmax.f32 %v550_v33, 0.0  ;;  %v307_v42 = vmax.f32 %v551_v34, 0.0  ;;  %v553_v43 = vround.rtne.f32 %v245_v35 }
  0x3b   : > { %v334_v44 = vmin.f32 %v302_v36, 255.0  ;;  %v335_v45 = vmin.f32 %v303_v37, 255.0  ;;  %v336_v46 = vmin.f32 %v304_v38, 255.0  ;;  %v308_v47 = vmax.f32 %v552_v39, 0.0 }
  0x3c   : > { %v337_v48 = vmin.f32 %v305_v40, 255.0  ;;  %v338_v49 = vmin.f32 %v306_v41, 255.0  ;;  %v339_v50 = vmin.f32 %v307_v42, 255.0  ;;  %v309_v51 = vmax.f32 %v553_v43, 0.0 }
  0x3d   : > { %v366_v52 = vsub.f32 %v334_v44, %v677_v5  ;;  %v367_v53 = vsub.f32 %v335_v45, %v677_v5  ;;  %v368_v54 = vsub.f32 %v336_v46, %v677_v5  ;;  %v340_v55 = vmin.f32 %v308_v47, 255.0 }
  0x3e   : > { %v369_v56 = vsub.f32 %v337_v48, %v677_v5  ;;  %v370_v57 = vsub.f32 %v338_v49, %v677_v5  ;;  %v371_v58 = vsub.f32 %v339_v50, %v677_v5  ;;  %v341_v59 = vmin.f32 %v309_v51, 255.0 }
  0x3f   : > { %v399_v63 = vmul.f32 %v684_v11, %v366_v52  ;;  %v400_v1 = vmul.f32 %v684_v11, %v367_v53  ;;  %v401_v2 = vmul.f32 %v684_v11, %v368_v54  ;;  %v372_v3 = vsub.f32 %v340_v55, %v677_v5 }
  0x40   : > { %v402_v8 = vmul.f32 %v684_v11, %v369_v56  ;;  %v403_v9 = vmul.f32 %v684_v11, %v370_v57  ;;  %v404_v10 = vmul.f32 %v684_v11, %v371_v58  ;;  %v373_v12 = vsub.f32 %v341_v59, %v677_v5 }
  0x41   : > { %431 = vst [vmem:[%s709_s28 + $0x40] sm:$0xff] %v399_v63  ;;  %432 = vst [vmem:[%s709_s28 + $0x48] sm:$0xff] %v400_v1  ;;  %v405_v14 = vmul.f32 %v684_v11, %v372_v3  ;;  %v213_v15 = vmul.f32 %v671_v0, %v177_v60  ;;  %v214_v16 = vmul.f32 %v671_v0, %v178_v61  ;;  %v185_v63 = vld [vmem:[%s669_s25 + $0xc0] sm:$0xff]  ;;  %v186_v1 = vld [vmem:[%s669_s25 + $0xc8] sm:$0xff] }
  0x42   : > { %433 = vst [vmem:[%s709_s28 + $0x50] sm:$0xff] %v401_v2  ;;  %v215_v17 = vmul.f32 %v671_v0, %v179_v62  ;;  %434 = vst [vmem:[%s709_s28 + $0x58] sm:$0xff] %v402_v8  ;;  %v406_v19 = vmul.f32 %v684_v11, %v373_v12  ;;  %v216_v20 = vmul.f32 %v671_v0, %v180_v4  ;;  %v187_v2 = vld [vmem:[%s669_s25 + $0xd0] sm:$0xff]  ;;  %v188_v8 = vld [vmem:[%s669_s25 + $0xd8] sm:$0xff] }
  0x43   : > { %435 = vst [vmem:[%s709_s28 + $0x60] sm:$0xff] %v403_v9  ;;  %436 = vst [vmem:[%s709_s28 + $0x68] sm:$0xff] %v404_v10  ;;  %v217_v21 = vmul.f32 %v671_v0, %v181_v6  ;;  %v218_v22 = vmul.f32 %v671_v0, %v182_v7  ;;  %v246_v23 = vadd.f32 %v677_v5, %v213_v15  ;;  %v189_v9 = vld [vmem:[%s669_s25 + $0xe0] sm:$0xff]  ;;  %v190_v10 = vld [vmem:[%s669_s25 + $0xe8] sm:$0xff] }
  0x44   : > { %437 = vst [vmem:[%s709_s28 + $0x70] sm:$0xff] %v405_v14  ;;  %v247_v24 = vadd.f32 %v677_v5, %v214_v16  ;;  %v248_v25 = vadd.f32 %v677_v5, %v215_v17  ;;  %v219_v26 = vmul.f32 %v671_v0, %v183_v13  ;;  %438 = vst [vmem:[%s709_s28 + $0x78] sm:$0xff] %v406_v19  ;;  %v191_v16 = vld [vmem:[%s669_s25 + $0xf0] sm:$0xff] }
  0x45   : > { %v249_v27 = vadd.f32 %v677_v5, %v216_v20  ;;  %v250_v28 = vadd.f32 %v677_v5, %v217_v21  ;;  %v251_v29 = vadd.f32 %v677_v5, %v218_v22  ;;  %v220_v30 = vmul.f32 %v671_v0, %v184_v18  ;;  %v192_v21 = vld [vmem:[%s669_s25 + $0xf8] sm:$0xff] }
  0x46   : > { %v554_v31 = vround.rtne.f32 %v246_v23  ;;  %v555_v32 = vround.rtne.f32 %v247_v24  ;;  %v556_v33 = vround.rtne.f32 %v248_v25  ;;  %v252_v34 = vadd.f32 %v677_v5, %v219_v26 }
  0x47   : > { %v557_v35 = vround.rtne.f32 %v249_v27  ;;  %v558_v36 = vround.rtne.f32 %v250_v28  ;;  %v559_v37 = vround.rtne.f32 %v251_v29  ;;  %v253_v38 = vadd.f32 %v677_v5, %v220_v30 }
  0x48   : > { %v310_v39 = vmax.f32 %v554_v31, 0.0  ;;  %v311_v40 = vmax.f32 %v555_v32, 0.0  ;;  %v312_v41 = vmax.f32 %v556_v33, 0.0  ;;  %v560_v42 = vround.rtne.f32 %v252_v34 }
  0x49   : > { %v313_v43 = vmax.f32 %v557_v35, 0.0  ;;  %v314_v44 = vmax.f32 %v558_v36, 0.0  ;;  %v315_v45 = vmax.f32 %v559_v37, 0.0  ;;  %v561_v46 = vround.rtne.f32 %v253_v38 }
  0x4a   : > { %v342_v47 = vmin.f32 %v310_v39, 255.0  ;;  %v343_v48 = vmin.f32 %v311_v40, 255.0  ;;  %v344_v49 = vmin.f32 %v312_v41, 255.0  ;;  %v316_v50 = vmax.f32 %v560_v42, 0.0 }
  0x4b   : > { %v345_v51 = vmin.f32 %v313_v43, 255.0  ;;  %v346_v52 = vmin.f32 %v314_v44, 255.0  ;;  %v347_v53 = vmin.f32 %v315_v45, 255.0  ;;  %v317_v54 = vmax.f32 %v561_v46, 0.0 }
  0x4c   : > { %v374_v55 = vsub.f32 %v342_v47, %v677_v5  ;;  %v375_v56 = vsub.f32 %v343_v48, %v677_v5  ;;  %v376_v57 = vsub.f32 %v344_v49, %v677_v5  ;;  %v348_v58 = vmin.f32 %v316_v50, 255.0 }
  0x4d   : > { %v377_v59 = vsub.f32 %v345_v51, %v677_v5  ;;  %v378_v60 = vsub.f32 %v346_v52, %v677_v5  ;;  %v379_v61 = vsub.f32 %v347_v53, %v677_v5  ;;  %v349_v62 = vmin.f32 %v317_v54, 255.0 }
  0x4e   : > { %v407_v3 = vmul.f32 %v684_v11, %v374_v55  ;;  %v408_v4 = vmul.f32 %v684_v11, %v375_v56  ;;  %v409_v6 = vmul.f32 %v684_v11, %v376_v57  ;;  %v380_v7 = vsub.f32 %v348_v58, %v677_v5 }
  0x4f   : > { %v410_v12 = vmul.f32 %v684_v11, %v377_v59  ;;  %v411_v13 = vmul.f32 %v684_v11, %v378_v60  ;;  %v412_v14 = vmul.f32 %v684_v11, %v379_v61  ;;  %v381_v15 = vsub.f32 %v349_v62, %v677_v5 }
  0x50   : > { %439 = vst [vmem:[%s709_s28 + $0x80] sm:$0xff] %v407_v3  ;;  %440 = vst [vmem:[%s709_s28 + $0x88] sm:$0xff] %v408_v4  ;;  %v413_v17 = vmul.f32 %v684_v11, %v380_v7  ;;  %v221_v18 = vmul.f32 %v671_v0, %v185_v63  ;;  %v222_v19 = vmul.f32 %v671_v0, %v186_v1 }
  0x51   : > { %441 = vst [vmem:[%s709_s28 + $0x90] sm:$0xff] %v409_v6  ;;  %v223_v20 = vmul.f32 %v671_v0, %v187_v2  ;;  %442 = vst [vmem:[%s709_s28 + $0x98] sm:$0xff] %v410_v12  ;;  %v414_v22 = vmul.f32 %v684_v11, %v381_v15  ;;  %v224_v23 = vmul.f32 %v671_v0, %v188_v8 }
  0x52   : > { %443 = vst [vmem:[%s709_s28 + $0xa0] sm:$0xff] %v411_v13  ;;  %444 = vst [vmem:[%s709_s28 + $0xa8] sm:$0xff] %v412_v14  ;;  %v225_v24 = vmul.f32 %v671_v0, %v189_v9  ;;  %v226_v25 = vmul.f32 %v671_v0, %v190_v10  ;;  %v254_v26 = vadd.f32 %v677_v5, %v221_v18 }
  0x53   : > { %445 = vst [vmem:[%s709_s28 + $0xb0] sm:$0xff] %v413_v17  ;;  %v255_v27 = vadd.f32 %v677_v5, %v222_v19  ;;  %v256_v28 = vadd.f32 %v677_v5, %v223_v20  ;;  %v227_v29 = vmul.f32 %v671_v0, %v191_v16  ;;  %446 = vst [vmem:[%s709_s28 + $0xb8] sm:$0xff] %v414_v22 }
  0x54   : > { %v257_v30 = vadd.f32 %v677_v5, %v224_v23  ;;  %v258_v31 = vadd.f32 %v677_v5, %v225_v24  ;;  %v259_v32 = vadd.f32 %v677_v5, %v226_v25  ;;  %v228_v33 = vmul.f32 %v671_v0, %v192_v21 }
  0x55   : > { %v562_v34 = vround.rtne.f32 %v254_v26  ;;  %v563_v35 = vround.rtne.f32 %v255_v27  ;;  %v564_v36 = vround.rtne.f32 %v256_v28  ;;  %v260_v37 = vadd.f32 %v677_v5, %v227_v29 }
  0x56   : > { %v565_v38 = vround.rtne.f32 %v257_v30  ;;  %v566_v39 = vround.rtne.f32 %v258_v31  ;;  %v567_v40 = vround.rtne.f32 %v259_v32  ;;  %v261_v41 = vadd.f32 %v677_v5, %v228_v33 }
  0x57   : > { %v318_v42 = vmax.f32 %v562_v34, 0.0  ;;  %v319_v43 = vmax.f32 %v563_v35, 0.0  ;;  %v320_v44 = vmax.f32 %v564_v36, 0.0  ;;  %v568_v45 = vround.rtne.f32 %v260_v37 }
  0x58   : > { %v321_v46 = vmax.f32 %v565_v38, 0.0  ;;  %v322_v47 = vmax.f32 %v566_v39, 0.0  ;;  %v323_v48 = vmax.f32 %v567_v40, 0.0  ;;  %v569_v49 = vround.rtne.f32 %v261_v41 }
  0x59   : > { %v350_v50 = vmin.f32 %v318_v42, 255.0  ;;  %v351_v0 = vmin.f32 %v319_v43, 255.0  ;;  %v352_v51 = vmin.f32 %v320_v44, 255.0  ;;  %v324_v52 = vmax.f32 %v568_v45, 0.0 }
  0x5a   : > { %v353_v53 = vmin.f32 %v321_v46, 255.0  ;;  %v354_v54 = vmin.f32 %v322_v47, 255.0  ;;  %v355_v55 = vmin.f32 %v323_v48, 255.0  ;;  %v325_v56 = vmax.f32 %v569_v49, 0.0 }
  0x5b   : > { %v382_v57 = vsub.f32 %v350_v50, %v677_v5  ;;  %v383_v58 = vsub.f32 %v351_v0, %v677_v5  ;;  %v384_v59 = vsub.f32 %v352_v51, %v677_v5  ;;  %v356_v60 = vmin.f32 %v324_v52, 255.0 }
  0x5c   : > { %v385_v61 = vsub.f32 %v353_v53, %v677_v5  ;;  %v386_v62 = vsub.f32 %v354_v54, %v677_v5  ;;  %v387_v63 = vsub.f32 %v355_v55, %v677_v5  ;;  %v357_v1 = vmin.f32 %v325_v56, 255.0 }
  0x5d   : > { %v415_v2 = vmul.f32 %v684_v11, %v382_v57  ;;  %v416_v3 = vmul.f32 %v684_v11, %v383_v58  ;;  %v417_v4 = vmul.f32 %v684_v11, %v384_v59  ;;  %v388_v6 = vsub.f32 %v356_v60, %v677_v5 }
  0x5e   : > { %v418_v7 = vmul.f32 %v684_v11, %v385_v61  ;;  %v419_v8 = vmul.f32 %v684_v11, %v386_v62  ;;  %v420_v9 = vmul.f32 %v684_v11, %v387_v63  ;;  %v389_v10 = vsub.f32 %v357_v1, %v677_v5 }
  0x5f   : > { %447 = vst [vmem:[%s709_s28 + $0xc0] sm:$0xff] %v415_v2  ;;  %448 = vst [vmem:[%s709_s28 + $0xc8] sm:$0xff] %v416_v3  ;;  %v421_v12 = vmul.f32 %v684_v11, %v388_v6 }
  0x60   : > { %449 = vst [vmem:[%s709_s28 + $0xd0] sm:$0xff] %v417_v4  ;;  %450 = vst [vmem:[%s709_s28 + $0xd8] sm:$0xff] %v418_v7  ;;  %v422_v13 = vmul.f32 %v684_v11, %v389_v10 }
  0x61   : > { %451 = vst [vmem:[%s709_s28 + $0xe0] sm:$0xff] %v419_v8  ;;  %452 = vst [vmem:[%s709_s28 + $0xe8] sm:$0xff] %v420_v9 }
  0x62   : > { %453 = vst [vmem:[%s709_s28 + $0xf0] sm:$0xff] %v421_v12  ;;  %454 = vst [vmem:[%s709_s28 + $0xf8] sm:$0xff] %v422_v13 }
  0x63 PF: > { %s13_s9 = sadd.s32 1, %s614_s9  }
  0x64   : > { %p10_p1 = scmp.ge.s32.totalorder %s13_s9, 4  }
  0x66   :  { %12 = sbr.rel (!%p10_p1) target bundleno = 1 (0x1), region = 63 }
  0x6d   :  { %477 = vsyncpa [#allocation3], 1 }
  0x6e   :  { %479 = vsyncpa [#allocation3 + $0x1], 1 }

// kernel: quant_fx_forward.2
= control target key start
LH: loop header
LB: loop body
LE: loop exit
PB: predicated region body
PF: predicated region fallthrough
CT: control target
= control target key end

     0   :  { %9 = vsyncpa [#allocation3], 0  ;;  %s1177_s15 = smov 0   ;;  %s1512_s0 = inlined_call_operand.vmem [shape: f32[3], index: 0, kind: input, shape index: {}]   ;;  %s1513_s1 = inlined_call_operand.vmem [shape: f32[512,36], index: 1, kind: input, shape index: {}]   ;;  %s1514_s2 = inlined_call_operand.vmem [shape: f32[36,128], index: 2, kind: input, shape index: {}]   ;;  %s1515_s3 = inlined_call_operand.vmem [shape: f32[1,128], index: 3, kind: input, shape index: {}]   ;;  %s1516_s4 = inlined_call_operand.vmem [shape: f32[512,128], index: 4, kind: output, shape index: {}]  }
   0x1 LB: > { %s915_s16 = sadd.s32 4294967295, %s1149_s15   ;;  %p917_p0 = scmp.ge.s32.totalorder %s1149_s15, 1  ;;  %s1149_s15 = sphi %s1177_s15, %s15_s15  }
   0x2   : > { %p135_p1 = scmp.lt.s32.totalorder %s1149_s15, 3  ;;  %s148_s19 = sshll.u32 %s1512_s0, 4  ;;  %s149_s19 = int_to_ptr.vmem [resolvable:$true] %s148_s19 }
   0x3   : > { %p1192_p3 = scmp.eq.s32.totalorder %s915_s16, 0  ;;  %s1124_s22 = scalar_lea.vmem %s149_s19, 16 }
   0x4   : > { %p1188_p2 = pnand %p917_p0, %p135_p1  ;;  %p1125_p6 = scmp.ne.s32.totalorder %s149_s19, %s1124_s22 }
   0x5   : > { %p1132_p10 = scmp.lt.s32.totalorder %s149_s19, %s149_s19  ;;  %p1133_p11 = scmp.lt.s32.totalorder %s1124_s22, %s1124_s22 }
   0x6   : > { %p1109_p4 = pneg %p1188_p2 }
   0x7   : > { %p1134_p12 = por %p1133_p11, %p1132_p10 }
   0x8   : > { %p1110_p5 = pnand %p1192_p3, %p1109_p4 }
   0xa   : > { %p1126_p7 = pneg %p1110_p5 }
   0xc   : > { %p1127_p8 = pnand %p1126_p7, %p1125_p6 }
   0xe   : > { %p1128_p9 = pneg %p1127_p8 }
  0x10   : > { %p1135_p13 = pnand %p1134_p12, %p1128_p9 }
  0x12   : > { %1138 = shalt.err (!%p1135_p13)
}
  0x13   : > { %s1151_s23 = smov [#allocation2]   ;;  %176 = sbr.rel (%p1188_p2) target bundleno = 315 (0x13b), region = 36 }
  0x14   : > { %1112 = dma.vmem_to_smem (!%p1110_p5), %s149_s19, 16, %s1151_s23, [#allocation3]  }
  0x1a   : > { %1144 = dma.done.wait (%p1192_p3), [#allocation3], 16  }
  0x1b   : > { %1146 = vsyncadd (%p1192_p3), [#allocation3], 4294967280 }
  0x1c   : > { %182 = sfence }
  0x1d   : > { %v477_v0 = vld [vmem:[%s1514_s2] sm:$0xff]  ;;  %v478_v1 = vld [vmem:[%s1514_s2 + $0x8] sm:$0xff]  ;;  %v479_v2 = vld [vmem:[%s1514_s2 + $0x10] sm:$0xff]  ;;  %s922_s30 = sshll.u32 %s915_s16, 5  ;;  %s215_s7 = sld [smem:[#allocation2]]  ;;  %vm586_vm0 = vcmask 1043456  }
  0x1e   : > { %v1059_v3 = vpack.c.bf16 %v478_v1, %v477_v0  ;;  %v480_v4 = vld [vmem:[%s1514_s2 + $0x18] sm:$0xff]  ;;  %p204_p0 = scmp.lt.s32.totalorder %s922_s30, 63  ;;  %s926_s8 = sld [smem:[#allocation2 + $0x1]]  ;;  %v481_v6 = vld [vmem:[%s1514_s2 + $0x20] sm:$0xf]  ;;  %vm489_vm1 = vcmask 293888  }
  0x1f   : > { %v1063_v5 = vpack.c.bf16 %v480_v4, %v479_v2  ;;  %s927_s9 = sld [smem:[#allocation2 + $0x2]] }
  0x20   : > { %1060 = vmatprep.subr.bf16.mxu0 %v1059_v3  ;;  %1067 = vmatprep.subr.bf16.mxu1 %v1059_v3  ;;  %s1520_s30 = smov (!%p204_p0, %s922_s30), 63 }
  0x21   : > { %1062 = vmatpush3.bf16.msra.mxu0 %v1059_v3  ;;  %1070 = vmatpush3.bf16.msra.mxu1 %v1059_v3  ;;  %s923_s10 = sshll.u32 %s1520_s30, 3 }
  0x22   : > { %1064 = vmatprep.subr.bf16.mxu0 %v1063_v5  ;;  %1068 = vmatprep.subr.bf16.mxu1 %v1063_v5  ;;  %s1229_s16 = scalar_lea.vmem %s1513_s1, %s923_s10  ;;  %s1443_s21 = scalar_lea.vmem %s1516_s4, %s923_s10 }
  0x23   : > { %v218_v7 = vld [vmem:[%s1229_s16] sm:$0xff]  ;;  %v1232_v8 = vstv %s215_s7  ;;  %v219_v10 = vld [vmem:[%s1229_s16 + $0x8] sm:$0xff]  ;;  %v220_v15 = vld [vmem:[%s1229_s16 + $0x10] sm:$0xff] }
  0x24   : > { %v234_v9 = vld [vmem:[%s1229_s16 + $0x80] sm:$0xff]  ;;  %v251_v11 = vmul.f32 %v1232_v8, %v218_v7  ;;  %v1237_v12 = vstv %s926_s8  ;;  %v235_v14 = vld [vmem:[%s1229_s16 + $0x88] sm:$0xff]  ;;  %v252_v17 = vmul.f32 %v1232_v8, %v219_v10  ;;  %v253_v19 = vmul.f32 %v1232_v8, %v220_v15  ;;  %v236_v20 = vld [vmem:[%s1229_s16 + $0x90] sm:$0xff] }
  0x25   : > { %1066 = vmatpush3.bf16.msra.mxu0 %v1063_v5  ;;  %1071 = vmatpush3.bf16.msra.mxu1 %v1063_v5  ;;  %v267_v13 = vmul.f32 %v1232_v8, %v234_v9  ;;  %v1244_v16 = vstv %s927_s9  ;;  %v268_v18 = vmul.f32 %v1232_v8, %v235_v14  ;;  %v221_v21 = vld [vmem:[%s1229_s16 + $0x18] sm:$0xff]  ;;  %v269_v25 = vmul.f32 %v1232_v8, %v236_v20  ;;  %v222_v63 = vld [vmem:[%s1229_s16 + $0x20] sm:$0xff]  ;;  %v223_v5 = vld [vmem:[%s1229_s16 + $0x28] sm:$0xff] }
  0x26   : > { %1009 = vmatprep.subr.msk.mxu0 %vm586_vm0, %v481_v6  ;;  %1069 = vmatprep.subr.msk.mxu1 %vm586_vm0, %v481_v6  ;;  %v237_v22 = vld [vmem:[%s1229_s16 + $0x98] sm:$0xff]  ;;  %v284_v23 = vadd.f32 %v1237_v12, %v251_v11  ;;  %v254_v26 = vmul.f32 %v1232_v8, %v221_v21  ;;  %v285_v27 = vadd.f32 %v1237_v12, %v252_v17  ;;  %v238_v4 = vld [vmem:[%s1229_s16 + $0xa0] sm:$0xff]  ;;  %v239_v11 = vld [vmem:[%s1229_s16 + $0xa8] sm:$0xff] }
  0x27   : > { %v300_v24 = vadd.f32 %v1237_v12, %v267_v13  ;;  %v301_v28 = vadd.f32 %v1237_v12, %v268_v18  ;;  %v286_v29 = vadd.f32 %v1237_v12, %v253_v19  ;;  %v270_v30 = vmul.f32 %v1232_v8, %v237_v22  ;;  %v224_v13 = vld [vmem:[%s1229_s16 + $0x30] sm:$0xff]  ;;  %v225_v19 = vld [vmem:[%s1229_s16 + $0x38] sm:$0xff] }
  0x28   : > { %v1073_v31 = vround.rtne.f32 %v284_v23  ;;  %v302_v33 = vadd.f32 %v1237_v12, %v269_v25  ;;  %v287_v34 = vadd.f32 %v1237_v12, %v254_v26  ;;  %v1074_v35 = vround.rtne.f32 %v285_v27  ;;  %v240_v18 = vld [vmem:[%s1229_s16 + $0xb0] sm:$0xff]  ;;  %v241_v23 = vld [vmem:[%s1229_s16 + $0xb8] sm:$0xff] }
  0x29   : > { %1010 = vmatpush3.msk.msra.mxu0 %vm586_vm0, %v481_v6  ;;  %1072 = vmatpush3.msk.msra.mxu1 %vm586_vm0, %v481_v6  ;;  %v1089_v32 = vround.rtne.f32 %v300_v24  ;;  %v1090_v36 = vround.rtne.f32 %v301_v28  ;;  %v1075_v37 = vround.rtne.f32 %v286_v29  ;;  %v303_v38 = vadd.f32 %v1237_v12, %v270_v30 }
  0x2a   : > { %v348_v39 = vmax.f32 %v1073_v31, 0.0  ;;  %v1091_v41 = vround.rtne.f32 %v302_v33  ;;  %v1076_v42 = vround.rtne.f32 %v287_v34  ;;  %v349_v43 = vmax.f32 %v1074_v35, 0.0 }
  0x2b   : > { %v364_v40 = vmax.f32 %v1089_v32, 0.0  ;;  %v365_v44 = vmax.f32 %v1090_v36, 0.0  ;;  %v350_v45 = vmax.f32 %v1075_v37, 0.0  ;;  %v1092_v46 = vround.rtne.f32 %v303_v38 }
  0x2c   : > { %v380_v47 = vmin.f32 %v348_v39, 255.0  ;;  %v366_v49 = vmax.f32 %v1091_v41, 0.0  ;;  %v351_v50 = vmax.f32 %v1076_v42, 0.0  ;;  %v381_v51 = vmin.f32 %v349_v43, 255.0 }
  0x2d   : > { %v396_v48 = vmin.f32 %v364_v40, 255.0  ;;  %v397_v52 = vmin.f32 %v365_v44, 255.0  ;;  %v382_v53 = vmin.f32 %v350_v45, 255.0  ;;  %v367_v54 = vmax.f32 %v1092_v46, 0.0 }
  0x2e   : > { %v412_v55 = vsub.f32 %v380_v47, %v1237_v12  ;;  %v398_v57 = vmin.f32 %v366_v49, 255.0  ;;  %v383_v58 = vmin.f32 %v351_v50, 255.0  ;;  %v413_v59 = vsub.f32 %v381_v51, %v1237_v12 }
  0x2f   : > { %v428_v56 = vsub.f32 %v396_v48, %v1237_v12  ;;  %v429_v60 = vsub.f32 %v397_v52, %v1237_v12  ;;  %v414_v61 = vsub.f32 %v382_v53, %v1237_v12  ;;  %v399_v62 = vmin.f32 %v367_v54, 255.0 }
  0x30   : > { %v445_v0 = vmul.f32 %v1244_v16, %v412_v55  ;;  %v430_v2 = vsub.f32 %v398_v57, %v1237_v12  ;;  %v415_v3 = vsub.f32 %v383_v58, %v1237_v12  ;;  %v446_v6 = vmul.f32 %v1244_v16, %v413_v59 }
  0x31   : > { %v461_v1 = vmul.f32 %v1244_v16, %v428_v56  ;;  %v462_v7 = vmul.f32 %v1244_v16, %v429_v60  ;;  %v447_v9 = vmul.f32 %v1244_v16, %v414_v61  ;;  %v431_v10 = vsub.f32 %v399_v62, %v1237_v12 }
  0x32   : > { %1011 = vmatprep.mubr.msk.f32.mxu0 %vm489_vm1, %v445_v0  ;;  %v463_v14 = vmul.f32 %v1244_v16, %v430_v2  ;;  %v448_v15 = vmul.f32 %v1244_v16, %v415_v3  ;;  %v255_v17 = vmul.f32 %v1232_v8, %v222_v63  ;;  %v271_v21 = vmul.f32 %v1232_v8, %v238_v4  ;;  %v226_v63 = vld [vmem:[%s1229_s16 + $0x40] sm:$0xff] }
  0x33   : > { %1035 = vmatprep.mubr.msk.f32.mxu1 %vm489_vm1, %v461_v1  ;;  %1012 = vmatmul.mubr.msk.f32.vlgmr.msra.gmra.mrb[0].mxu0 %vm489_vm1, %v446_v6  ;;  %v464_v20 = vmul.f32 %v1244_v16, %v431_v10  ;;  %v256_v22 = vmul.f32 %v1232_v8, %v223_v5  ;;  %v272_v25 = vmul.f32 %v1232_v8, %v239_v11  ;;  %v242_v4 = vld [vmem:[%s1229_s16 + $0xc0] sm:$0xff]  ;;  %v227_v10 = vld [vmem:[%s1229_s16 + $0x48] sm:$0xff] }
  0x34   : > { %1036 = vmatmul.mubr.msk.f32.vlgmr.msra.gmra.mrb[0].mxu1 %vm489_vm1, %v462_v7  ;;  %1014 = vmatprep.mubr.msk.f32.mxu0 %vm489_vm1, %v447_v9  ;;  %v288_v24 = vadd.f32 %v1237_v12, %v255_v17  ;;  %v257_v26 = vmul.f32 %v1232_v8, %v224_v13  ;;  %v304_v27 = vadd.f32 %v1237_v12, %v271_v21  ;;  %v243_v17 = vld [vmem:[%s1229_s16 + $0xc8] sm:$0xff] }
  0x35   : > { %1038 = vmatprep.mubr.msk.f32.mxu1 %vm489_vm1, %v463_v14  ;;  %v289_v28 = vadd.f32 %v1237_v12, %v256_v22  ;;  %v273_v29 = vmul.f32 %v1232_v8, %v240_v18  ;;  %v258_v30 = vmul.f32 %v1232_v8, %v225_v19  ;;  %v305_v32 = vadd.f32 %v1237_v12, %v272_v25  ;;  %v228_v18 = vld [vmem:[%s1229_s16 + $0x50] sm:$0xff] }
  0x36   : > { %v1077_v31 = vround.rtne.f32 %v288_v24  ;;  %v290_v33 = vadd.f32 %v1237_v12, %v257_v26  ;;  %v274_v34 = vmul.f32 %v1232_v8, %v241_v23  ;;  %v1093_v35 = vround.rtne.f32 %v304_v27  ;;  %v244_v19 = vld [vmem:[%s1229_s16 + $0xd0] sm:$0xff]  ;;  %v229_v23 = vld [vmem:[%s1229_s16 + $0x58] sm:$0xff] }
  0x37   : > { %1015 = vmatmul.mubr.msk.f32.gmra.mrb[2].mxu0 %vm489_vm1, %v448_v15  ;;  %v1078_v36 = vround.rtne.f32 %v289_v28  ;;  %v306_v37 = vadd.f32 %v1237_v12, %v273_v29  ;;  %v291_v38 = vadd.f32 %v1237_v12, %v258_v30  ;;  %v1094_v40 = vround.rtne.f32 %v305_v32  ;;  %v245_v24 = vld [vmem:[%s1229_s16 + $0xd8] sm:$0xff] }
  0x38   : > { %1039 = vmatmul.mubr.msk.f32.gmra.mrb[2].mxu1 %vm489_vm1, %v464_v20  ;;  %v352_v39 = vmax.f32 %v1077_v31, 0.0  ;;  %v1079_v41 = vround.rtne.f32 %v290_v33  ;;  %v307_v42 = vadd.f32 %v1237_v12, %v274_v34  ;;  %v368_v43 = vmax.f32 %v1093_v35, 0.0 }
  0x39   : > { %v353_v44 = vmax.f32 %v1078_v36, 0.0  ;;  %v1095_v45 = vround.rtne.f32 %v306_v37  ;;  %v1080_v46 = vround.rtne.f32 %v291_v38  ;;  %v369_v48 = vmax.f32 %v1094_v40, 0.0 }
  0x3a   : > { %v384_v47 = vmin.f32 %v352_v39, 255.0  ;;  %v354_v49 = vmax.f32 %v1079_v41, 0.0  ;;  %v1096_v50 = vround.rtne.f32 %v307_v42  ;;  %v400_v51 = vmin.f32 %v368_v43, 255.0 }
  0x3b   : > { %v385_v52 = vmin.f32 %v353_v44, 255.0  ;;  %v370_v53 = vmax.f32 %v1095_v45, 0.0  ;;  %v355_v54 = vmax.f32 %v1080_v46, 0.0  ;;  %v401_v56 = vmin.f32 %v369_v48, 255.0 }
  0x3c   : > { %v416_v55 = vsub.f32 %v384_v47, %v1237_v12  ;;  %v386_v57 = vmin.f32 %v354_v49, 255.0  ;;  %v371_v58 = vmax.f32 %v1096_v50, 0.0  ;;  %v432_v59 = vsub.f32 %v400_v51, %v1237_v12 }
  0x3d   : > { %v417_v60 = vsub.f32 %v385_v52, %v1237_v12  ;;  %v402_v61 = vmin.f32 %v370_v53, 255.0  ;;  %v387_v62 = vmin.f32 %v355_v54, 255.0  ;;  %v433_v1 = vsub.f32 %v401_v56, %v1237_v12 }
  0x3e   : > { %v449_v0 = vmul.f32 %v1244_v16, %v416_v55  ;;  %v418_v2 = vsub.f32 %v386_v57, %v1237_v12  ;;  %v403_v3 = vmin.f32 %v371_v58, 255.0  ;;  %v465_v5 = vmul.f32 %v1244_v16, %v432_v59 }
  0x3f   : > { %v450_v6 = vmul.f32 %v1244_v16, %v417_v60  ;;  %v434_v7 = vsub.f32 %v402_v61, %v1237_v12  ;;  %v419_v9 = vsub.f32 %v387_v62, %v1237_v12  ;;  %v466_v11 = vmul.f32 %v1244_v16, %v433_v1 }
  0x40   : > { %1017 = vmatprep.mubr.msk.f32.mxu0 %vm489_vm1, %v449_v0  ;;  %v451_v13 = vmul.f32 %v1244_v16, %v418_v2  ;;  %v435_v14 = vsub.f32 %v403_v3, %v1237_v12  ;;  %v259_v15 = vmul.f32 %v1232_v8, %v226_v63  ;;  %1041 = vmatprep.mubr.msk.f32.mxu1 %vm489_vm1, %v465_v5  ;;  %v230_v0 = vld [vmem:[%s1229_s16 + $0x60] sm:$0xff] }
  0x41   : > { %1018 = vmatmul.mubr.msk.f32.gmra.mrb[4].mxu0 %vm489_vm1, %v450_v6  ;;  %v467_v20 = vmul.f32 %v1244_v16, %v434_v7  ;;  %v452_v21 = vmul.f32 %v1244_v16, %v419_v9  ;;  %v275_v22 = vmul.f32 %v1232_v8, %v242_v4  ;;  %1042 = vmatmul.mubr.msk.f32.gmra.mrb[4].mxu1 %vm489_vm1, %v466_v11  ;;  %v246_v5 = vld [vmem:[%s1229_s16 + $0xe0] sm:$0xff]  ;;  %v231_v11 = vld [vmem:[%s1229_s16 + $0x68] sm:$0xff] }
  0x42   : > { %1020 = vmatprep.mubr.msk.f32.mxu0 %vm489_vm1, %v451_v13  ;;  %v468_v25 = vmul.f32 %v1244_v16, %v435_v14  ;;  %v292_v26 = vadd.f32 %v1237_v12, %v259_v15  ;;  %v260_v27 = vmul.f32 %v1232_v8, %v227_v10  ;;  %v276_v29 = vmul.f32 %v1232_v8, %v243_v17 }
  0x43   : > { %1044 = vmatprep.mubr.msk.f32.mxu1 %vm489_vm1, %v467_v20  ;;  %v308_v28 = vadd.f32 %v1237_v12, %v275_v22  ;;  %v261_v30 = vmul.f32 %v1232_v8, %v228_v18  ;;  %v277_v31 = vmul.f32 %v1232_v8, %v244_v19  ;;  %v262_v34 = vmul.f32 %v1232_v8, %v229_v23  ;;  %v247_v18 = vld [vmem:[%s1229_s16 + $0xe8] sm:$0xff]  ;;  %v232_v19 = vld [vmem:[%s1229_s16 + $0x70] sm:$0xff] }
  0x44   : > { %v1081_v32 = vround.rtne.f32 %v292_v26  ;;  %v293_v33 = vadd.f32 %v1237_v12, %v260_v27  ;;  %v278_v35 = vmul.f32 %v1232_v8, %v245_v24  ;;  %v309_v37 = vadd.f32 %v1237_v12, %v276_v29  ;;  %v248_v24 = vld [vmem:[%s1229_s16 + $0xf0] sm:$0xff] }
  0x45   : > { %1021 = vmatmul.mubr.msk.f32.gmra.mrb[6].mxu0 %vm489_vm1, %v452_v21  ;;  %v1097_v36 = vround.rtne.f32 %v308_v28  ;;  %v294_v38 = vadd.f32 %v1237_v12, %v261_v30  ;;  %v310_v39 = vadd.f32 %v1237_v12, %v277_v31  ;;  %1045 = vmatmul.mubr.msk.f32.gmra.mrb[6].mxu1 %vm489_vm1, %v468_v25  ;;  %v295_v42 = vadd.f32 %v1237_v12, %v262_v34  ;;  %v233_v25 = vld [vmem:[%s1229_s16 + $0x78] sm:$0xff] }
  0x46   : > { %v356_v40 = vmax.f32 %v1081_v32, 0.0  ;;  %v1082_v41 = vround.rtne.f32 %v293_v33  ;;  %v311_v43 = vadd.f32 %v1237_v12, %v278_v35  ;;  %v1098_v45 = vround.rtne.f32 %v309_v37  ;;  %v249_v30 = vld [vmem:[%s1229_s16 + $0xf8] sm:$0xff] }
  0x47   : > { %v372_v44 = vmax.f32 %v1097_v36, 0.0  ;;  %v1083_v46 = vround.rtne.f32 %v294_v38  ;;  %v1099_v47 = vround.rtne.f32 %v310_v39  ;;  %v1084_v50 = vround.rtne.f32 %v295_v42 }
  0x48   : > { %v388_v48 = vmin.f32 %v356_v40, 255.0  ;;  %v357_v49 = vmax.f32 %v1082_v41, 0.0  ;;  %v1100_v51 = vround.rtne.f32 %v311_v43  ;;  %v373_v53 = vmax.f32 %v1098_v45, 0.0 }
  0x49   : > { %v404_v52 = vmin.f32 %v372_v44, 255.0  ;;  %v358_v54 = vmax.f32 %v1083_v46, 0.0  ;;  %v374_v55 = vmax.f32 %v1099_v47, 0.0  ;;  %v359_v58 = vmax.f32 %v1084_v50, 0.0 }
  0x4a   : > { %v420_v56 = vsub.f32 %v388_v48, %v1237_v12  ;;  %v389_v57 = vmin.f32 %v357_v49, 255.0  ;;  %v375_v59 = vmax.f32 %v1100_v51, 0.0  ;;  %v405_v61 = vmin.f32 %v373_v53, 255.0 }
  0x4b   : > { %v436_v60 = vsub.f32 %v404_v52, %v1237_v12  ;;  %v390_v62 = vmin.f32 %v358_v54, 255.0  ;;  %v406_v63 = vmin.f32 %v374_v55, 255.0  ;;  %v391_v3 = vmin.f32 %v359_v58, 255.0 }
  0x4c   : > { %v453_v1 = vmul.f32 %v1244_v16, %v420_v56  ;;  %v421_v2 = vsub.f32 %v389_v57, %v1237_v12  ;;  %v407_v4 = vmin.f32 %v375_v59, 255.0  ;;  %v437_v7 = vsub.f32 %v405_v61, %v1237_v12 }
  0x4d   : > { %v469_v6 = vmul.f32 %v1244_v16, %v436_v60  ;;  %v422_v9 = vsub.f32 %v390_v62, %v1237_v12  ;;  %v438_v10 = vsub.f32 %v406_v63, %v1237_v12  ;;  %v423_v14 = vsub.f32 %v391_v3, %v1237_v12 }
  0x4e   : > { %1023 = vmatprep.mubr.msk.f32.mxu0 %vm489_vm1, %v453_v1  ;;  %v454_v13 = vmul.f32 %v1244_v16, %v421_v2  ;;  %v439_v15 = vsub.f32 %v407_v4, %v1237_v12  ;;  %v263_v17 = vmul.f32 %v1232_v8, %v230_v0  ;;  %v470_v20 = vmul.f32 %v1244_v16, %v437_v7 }
  0x4f   : > { %1047 = vmatprep.mubr.msk.f32.mxu1 %vm489_vm1, %v469_v6  ;;  %v455_v21 = vmul.f32 %v1244_v16, %v422_v9  ;;  %v471_v22 = vmul.f32 %v1244_v16, %v438_v10  ;;  %v279_v23 = vmul.f32 %v1232_v8, %v246_v5  ;;  %v456_v26 = vmul.f32 %v1244_v16, %v423_v14 }
  0x50   : > { %1024 = vmatmul.mubr.msk.f32.gmra.mrb[8].mxu0 %vm489_vm1, %v454_v13  ;;  %v472_v27 = vmul.f32 %v1244_v16, %v439_v15  ;;  %v296_v28 = vadd.f32 %v1237_v12, %v263_v17  ;;  %v264_v29 = vmul.f32 %v1232_v8, %v231_v11  ;;  %1048 = vmatmul.mubr.msk.f32.gmra.mrb[8].mxu1 %vm489_vm1, %v470_v20 }
  0x51   : > { %1026 = vmatprep.mubr.msk.f32.mxu0 %vm489_vm1, %v455_v21  ;;  %v312_v31 = vadd.f32 %v1237_v12, %v279_v23  ;;  %v280_v32 = vmul.f32 %v1232_v8, %v247_v18  ;;  %v265_v33 = vmul.f32 %v1232_v8, %v232_v19  ;;  %1050 = vmatprep.mubr.msk.f32.mxu1 %vm489_vm1, %v471_v22 }
  0x52   : > { %v1085_v34 = vround.rtne.f32 %v296_v28  ;;  %v297_v35 = vadd.f32 %v1237_v12, %v264_v29  ;;  %v281_v36 = vmul.f32 %v1232_v8, %v248_v24  ;;  %v266_v37 = vmul.f32 %v1232_v8, %v233_v25 }
  0x53   : > { %v1101_v38 = vround.rtne.f32 %v312_v31  ;;  %v313_v39 = vadd.f32 %v1237_v12, %v280_v32  ;;  %v298_v40 = vadd.f32 %v1237_v12, %v265_v33  ;;  %v282_v41 = vmul.f32 %v1232_v8, %v249_v30 }
  0x54   : > { %1027 = vmatmul.mubr.msk.f32.gmra.mrb[10].mxu0 %vm489_vm1, %v456_v26  ;;  %v360_v42 = vmax.f32 %v1085_v34, 0.0  ;;  %v1086_v43 = vround.rtne.f32 %v297_v35  ;;  %v314_v44 = vadd.f32 %v1237_v12, %v281_v36  ;;  %v299_v45 = vadd.f32 %v1237_v12, %v266_v37  ;;  %1051 = vmatmul.mubr.msk.f32.gmra.mrb[10].mxu1 %vm489_vm1, %v472_v27 }
  0x55   : > { %v376_v46 = vmax.f32 %v1101_v38, 0.0  ;;  %v1102_v47 = vround.rtne.f32 %v313_v39  ;;  %v1087_v48 = vround.rtne.f32 %v298_v40  ;;  %v315_v49 = vadd.f32 %v1237_v12, %v282_v41 }
  0x56   : > { %v392_v50 = vmin.f32 %v360_v42, 255.0  ;;  %v361_v51 = vmax.f32 %v1086_v43, 0.0  ;;  %v1103_v52 = vround.rtne.f32 %v314_v44  ;;  %v1088_v53 = vround.rtne.f32 %v299_v45 }
  0x57   : > { %v408_v8 = vmin.f32 %v376_v46, 255.0  ;;  %v377_v54 = vmax.f32 %v1102_v47, 0.0  ;;  %v362_v55 = vmax.f32 %v1087_v48, 0.0  ;;  %v1104_v56 = vround.rtne.f32 %v315_v49 }
  0x58   : > { %v424_v57 = vsub.f32 %v392_v50, %v1237_v12  ;;  %v393_v58 = vmin.f32 %v361_v51, 255.0  ;;  %v378_v59 = vmax.f32 %v1103_v52, 0.0  ;;  %v363_v60 = vmax.f32 %v1088_v53, 0.0 }
  0x59   : > { %v440_v61 = vsub.f32 %v408_v8, %v1237_v12  ;;  %v409_v62 = vmin.f32 %v377_v54, 255.0  ;;  %v394_v63 = vmin.f32 %v362_v55, 255.0  ;;  %v379_v0 = vmax.f32 %v1104_v56, 0.0 }
  0x5a   : > { %v457_v1 = vmul.f32 %v1244_v16, %v424_v57  ;;  %v425_v2 = vsub.f32 %v393_v58, %v1237_v12  ;;  %v410_v3 = vmin.f32 %v378_v59, 255.0  ;;  %v395_v4 = vmin.f32 %v363_v60, 255.0 }
  0x5b   : > { %v473_v5 = vmul.f32 %v1244_v16, %v440_v61  ;;  %v441_v6 = vsub.f32 %v409_v62, %v1237_v12  ;;  %v426_v7 = vsub.f32 %v394_v63, %v1237_v12  ;;  %v411_v9 = vmin.f32 %v379_v0, 255.0 }
  0x5c   : > { %1029 = vmatprep.mubr.msk.f32.mxu0 %vm489_vm1, %v457_v1  ;;  %v458_v10 = vmul.f32 %v1244_v16, %v425_v2  ;;  %v442_v11 = vsub.f32 %v410_v3, %v1237_v12  ;;  %v427_v13 = vsub.f32 %v395_v4, %v1237_v12 }
  0x5d   : > { %1053 = vmatprep.mubr.msk.f32.mxu1 %vm489_vm1, %v473_v5  ;;  %v474_v14 = vmul.f32 %v1244_v16, %v441_v6  ;;  %v459_v15 = vmul.f32 %v1244_v16, %v426_v7  ;;  %v443_v17 = vsub.f32 %v411_v9, %v1237_v12  ;;  %v1436_v12 = vld [vmem:[%s1515_s3] ss:$0 sm:$0xff] }
  0x5e   : > { %1030 = vmatmul.mubr.msk.f32.gmra.mrb[12].mxu0 %vm489_vm1, %v458_v10  ;;  %v475_v18 = vmul.f32 %v1244_v16, %v442_v11  ;;  %v460_v19 = vmul.f32 %v1244_v16, %v427_v13 }
  0x5f   : > { %1054 = vmatmul.mubr.msk.f32.gmra.mrb[12].mxu1 %vm489_vm1, %v474_v14  ;;  %1032 = vmatprep.mubr.msk.f32.mxu0 %vm489_vm1, %v459_v15  ;;  %v476_v20 = vmul.f32 %v1244_v16, %v443_v17 }
  0x60   : > { %1056 = vmatprep.mubr.msk.f32.mxu1 %vm489_vm1, %v475_v18 }
  0x62   : > { %1033 = vmatmul.mubr.msk.f32.gmra.mrb[14].mxu0 %vm489_vm1, %v460_v19 }
  0x63   : > { %1057 = vmatmul.mubr.msk.f32.gmra.mrb[14].mxu1 %vm489_vm1, %v476_v20 }
 0x106   : > { %v1013_v16 = vpop.f32.mrb[0].mxu0 }
 0x107   : > { %v1037_v21 = vpop.f32.mrb[0].mxu1  ;;  %v662_v22 = vadd.f32 %v1013_v16, %v1436_v12  ;;  %v656_v24 = vpop.f32.mrb[1].mxu0 }
 0x108   : > { %v742_v23 = vadd.f32 %v1037_v21, %v1436_v12  ;;  %v736_v25 = vpop.f32.mrb[1].mxu1  ;;  %v657_v26 = vadd.f32 %v1436_v12, %v656_v24 }
 0x109   : > { %v737_v27 = vadd.f32 %v1436_v12, %v736_v25  ;;  %816 = vst [vmem:[%s1443_s21 + $0x8] sm:$0xff] %v662_v22 }
 0x10a   : > { %832 = vst [vmem:[%s1443_s21 + $0x88] sm:$0xff] %v742_v23  ;;  %815 = vst [vmem:[%s1443_s21] sm:$0xff] %v657_v26  ;;  %v1016_v28 = vpop.f32.mrb[2].mxu0 }
 0x10b   : > { %831 = vst [vmem:[%s1443_s21 + $0x80] sm:$0xff] %v737_v27  ;;  %v1040_v29 = vpop.f32.mrb[2].mxu1  ;;  %v672_v30 = vadd.f32 %v1016_v28, %v1436_v12  ;;  %v666_v32 = vpop.f32.mrb[3].mxu0 }
 0x10c   : > { %v752_v31 = vadd.f32 %v1040_v29, %v1436_v12  ;;  %v746_v33 = vpop.f32.mrb[3].mxu1  ;;  %v667_v34 = vadd.f32 %v1436_v12, %v666_v32 }
 0x10d   : > { %v747_v35 = vadd.f32 %v1436_v12, %v746_v33  ;;  %818 = vst [vmem:[%s1443_s21 + $0x18] sm:$0xff] %v672_v30 }
 0x10e   : > { %834 = vst [vmem:[%s1443_s21 + $0x98] sm:$0xff] %v752_v31  ;;  %817 = vst [vmem:[%s1443_s21 + $0x10] sm:$0xff] %v667_v34 }
 0x10f   : > { %833 = vst [vmem:[%s1443_s21 + $0x90] sm:$0xff] %v747_v35 }
 0x114   : > { %v1019_v36 = vpop.f32.mrb[4].mxu0  ;;  %v1043_v38 = vpop.f32.mrb[4].mxu1 }
 0x115   : > { %v682_v37 = vadd.f32 %v1019_v36, %v1436_v12  ;;  %v676_v39 = vpop.f32.mrb[5].mxu0  ;;  %v762_v40 = vadd.f32 %v1043_v38, %v1436_v12  ;;  %v756_v42 = vpop.f32.mrb[5].mxu1 }
 0x116   : > { %v677_v41 = vadd.f32 %v1436_v12, %v676_v39  ;;  %v757_v43 = vadd.f32 %v1436_v12, %v756_v42 }
 0x117   : > { %820 = vst [vmem:[%s1443_s21 + $0x28] sm:$0xff] %v682_v37  ;;  %836 = vst [vmem:[%s1443_s21 + $0xa8] sm:$0xff] %v762_v40 }
 0x118   : > { %819 = vst [vmem:[%s1443_s21 + $0x20] sm:$0xff] %v677_v41  ;;  %v1022_v44 = vpop.f32.mrb[6].mxu0  ;;  %835 = vst [vmem:[%s1443_s21 + $0xa0] sm:$0xff] %v757_v43  ;;  %v1046_v46 = vpop.f32.mrb[6].mxu1 }
 0x119   : > { %v692_v45 = vadd.f32 %v1022_v44, %v1436_v12  ;;  %v686_v47 = vpop.f32.mrb[7].mxu0  ;;  %v772_v48 = vadd.f32 %v1046_v46, %v1436_v12  ;;  %v766_v50 = vpop.f32.mrb[7].mxu1 }
 0x11a   : > { %v687_v49 = vadd.f32 %v1436_v12, %v686_v47  ;;  %v767_v51 = vadd.f32 %v1436_v12, %v766_v50 }
 0x11b   : > { %822 = vst [vmem:[%s1443_s21 + $0x38] sm:$0xff] %v692_v45  ;;  %838 = vst [vmem:[%s1443_s21 + $0xb8] sm:$0xff] %v772_v48 }
 0x11c   : > { %821 = vst [vmem:[%s1443_s21 + $0x30] sm:$0xff] %v687_v49  ;;  %837 = vst [vmem:[%s1443_s21 + $0xb0] sm:$0xff] %v767_v51 }
 0x123   : > { %v1025_v52 = vpop.f32.mrb[8].mxu0  ;;  %v1049_v8 = vpop.f32.mrb[8].mxu1 }
 0x124   : > { %v702_v53 = vadd.f32 %v1025_v52, %v1436_v12  ;;  %v696_v54 = vpop.f32.mrb[9].mxu0  ;;  %v782_v55 = vadd.f32 %v1049_v8, %v1436_v12  ;;  %v776_v57 = vpop.f32.mrb[9].mxu1 }
 0x125   : > { %v697_v56 = vadd.f32 %v1436_v12, %v696_v54  ;;  %v777_v58 = vadd.f32 %v1436_v12, %v776_v57 }
 0x126   : > { %824 = vst [vmem:[%s1443_s21 + $0x48] sm:$0xff] %v702_v53  ;;  %840 = vst [vmem:[%s1443_s21 + $0xc8] sm:$0xff] %v782_v55 }
 0x127   : > { %823 = vst [vmem:[%s1443_s21 + $0x40] sm:$0xff] %v697_v56  ;;  %v1028_v59 = vpop.f32.mrb[10].mxu0  ;;  %839 = vst [vmem:[%s1443_s21 + $0xc0] sm:$0xff] %v777_v58  ;;  %v1052_v61 = vpop.f32.mrb[10].mxu1 }
 0x128   : > { %v712_v60 = vadd.f32 %v1028_v59, %v1436_v12  ;;  %v706_v62 = vpop.f32.mrb[11].mxu0  ;;  %v792_v63 = vadd.f32 %v1052_v61, %v1436_v12  ;;  %v786_v1 = vpop.f32.mrb[11].mxu1 }
 0x129   : > { %v707_v0 = vadd.f32 %v1436_v12, %v706_v62  ;;  %v787_v2 = vadd.f32 %v1436_v12, %v786_v1 }
 0x12a   : > { %826 = vst [vmem:[%s1443_s21 + $0x58] sm:$0xff] %v712_v60  ;;  %842 = vst [vmem:[%s1443_s21 + $0xd8] sm:$0xff] %v792_v63 }
 0x12b   : > { %825 = vst [vmem:[%s1443_s21 + $0x50] sm:$0xff] %v707_v0  ;;  %841 = vst [vmem:[%s1443_s21 + $0xd0] sm:$0xff] %v787_v2 }
 0x131   : > { %v1031_v3 = vpop.f32.mrb[12].mxu0 }
 0x132   : > { %v722_v4 = vadd.f32 %v1031_v3, %v1436_v12  ;;  %v1055_v5 = vpop.f32.mrb[12].mxu1  ;;  %v716_v6 = vpop.f32.mrb[13].mxu0 }
 0x133   : > { %v802_v7 = vadd.f32 %v1055_v5, %v1436_v12  ;;  %v717_v9 = vadd.f32 %v1436_v12, %v716_v6  ;;  %v796_v10 = vpop.f32.mrb[13].mxu1 }
 0x134   : > { %828 = vst [vmem:[%s1443_s21 + $0x68] sm:$0xff] %v722_v4  ;;  %v797_v11 = vadd.f32 %v1436_v12, %v796_v10 }
 0x135   : > { %844 = vst [vmem:[%s1443_s21 + $0xe8] sm:$0xff] %v802_v7  ;;  %827 = vst [vmem:[%s1443_s21 + $0x60] sm:$0xff] %v717_v9  ;;  %v1034_v13 = vpop.f32.mrb[14].mxu0 }
 0x136   : > { %843 = vst [vmem:[%s1443_s21 + $0xe0] sm:$0xff] %v797_v11  ;;  %v732_v14 = vadd.f32 %v1034_v13, %v1436_v12  ;;  %v1058_v15 = vpop.f32.mrb[14].mxu1  ;;  %v726_v17 = vpop.f32.mrb[15].mxu0 }
 0x137   : > { %v812_v18 = vadd.f32 %v1058_v15, %v1436_v12  ;;  %v727_v19 = vadd.f32 %v1436_v12, %v726_v17  ;;  %v806_v20 = vpop.f32.mrb[15].mxu1 }
 0x138   : > { %830 = vst [vmem:[%s1443_s21 + $0x78] sm:$0xff] %v732_v14  ;;  %v807_v16 = vadd.f32 %v1436_v12, %v806_v20 }
 0x139   : > { %846 = vst [vmem:[%s1443_s21 + $0xf8] sm:$0xff] %v812_v18  ;;  %829 = vst [vmem:[%s1443_s21 + $0x70] sm:$0xff] %v727_v19 }
 0x13a   : > { %845 = vst [vmem:[%s1443_s21 + $0xf0] sm:$0xff] %v807_v16 }
 0x13b PF: > { %s15_s15 = sadd.s32 1, %s1149_s15  }
 0x13c   : > { %p12_p1 = scmp.ge.s32.totalorder %s15_s15, 4  }
 0x13e   :  { %14 = sbr.rel (!%p12_p1) target bundleno = 1 (0x1), region = 71 }
 0x145   :  { %869 = vsyncpa [#allocation3], 1 }
 0x146   :  { %871 = vsyncpa [#allocation3 + $0x1], 1 }

</bundles_post_ra>
